<compile_context>
chip_gen: v7x
topology: tpu7x:2x2x1
jax: 0.10.0
libtpu: 0.0.40
codegen_flags: <defaults>
</compile_context>

<pallas_src>
import jax
import jax.numpy as jnp
import numpy as np
from jax.experimental import pallas as pl
from jax.experimental.pallas import tpu as pltpu

# ---- model dimensions (consistent with the module's __init__) ---------------
ENV_DIM = 16
ARGS_DIM = 8
STATE_DIM = 32
PROG_DIM = 32
HIDDEN = 64
KEY_DIM = 16
N_PROGS = 8
RET_THRESHOLD = 0.5  # unused by forward(); kept for parity with __init__

# ---- packed-parameter / lane layout -----------------------------------------
LANES = 128
W1_OFF, W2_OFF, W3_OFF, W4_OFF, PROG_OFF = 0, 128, 256, 384, 512
PACKED_ROWS = PROG_OFF + N_PROGS          # 520

RET_LANE = 0                               # o3 / output lane 0  -> ret
SCORE_LO, SCORE_HI = 1, 1 + N_PROGS        # output lanes 1..8   -> log-probs
ARG_LO, ARG_HI = 9, 9 + ARGS_DIM           # lanes 9..16         -> new_args
KEY_LO, KEY_HI = 32, 32 + KEY_DIM          # o3 lanes 32..47     -> pkey (internal)
ONE_LANE = 127                             # constant-1 lane (folds biases into MXU)


# ----------------------------- Pallas kernel ---------------------------------
def npi_kernel(pid_ref, x_ref, p_ref, out_ref):
    f32 = jnp.float32
    x = x_ref[...]                                                  # (1, 128)

    # encoder: relu([env|args|...|1] @ W1)  (b_enc folded into row 127)
    state = jnp.maximum(
        jnp.dot(x, p_ref[W1_OFF:W1_OFF + 128, :], preferred_element_type=f32), 0.0)

    # program embedding: one prog_mem row, pre-shifted into lanes [32,64)
    prog = p_ref[pl.ds(PROG_OFF + pid_ref[0], 1), :]                # (1, 128)

    # core trunk: relu([state|prog|...|1] @ W2)  (b_core folded)
    z = state + prog
    h = jnp.maximum(
        jnp.dot(z, p_ref[W2_OFF:W2_OFF + 128, :], preferred_element_type=f32), 0.0)

    # fused heads: lane 0 = ret_logit, lanes 9..16 = new_args, lanes 32..47 = pkey
    o3 = jnp.dot(h, p_ref[W3_OFF:W3_OFF + 128, :], preferred_element_type=f32)

    # correlation scores: pkey (lanes 32..47) vs pkey_mem^T -> lanes 1..8 (lane-dense)
    sc = jnp.dot(o3, p_ref[W4_OFF:W4_OFF + 128, :], preferred_element_type=f32)

    lane = jax.lax.broadcasted_iota(jnp.int32, (1, LANES), 1)
    score_mask = (lane >= SCORE_LO) & (lane < SCORE_HI)

    # log_softmax over the 8 program scores (cross-lane reduce on the XLU)
    s = jnp.where(score_mask, sc, jnp.float32(-1e30))
    m = jnp.max(s, axis=-1, keepdims=True)
    lse = jnp.log(jnp.sum(jnp.exp(s - m), axis=-1, keepdims=True))
    logp = s - m - lse

    ret = 1.0 / (1.0 + jnp.exp(-o3))                                # keep lane 0 only

    out = jnp.where(lane == RET_LANE, ret, 0.0)
    out = out + jnp.where(score_mask, logp, 0.0)
    out = out + jnp.where((lane >= ARG_LO) & (lane < ARG_HI), o3, 0.0)
    out_ref[...] = out                                              # (1, 128) lane-dense


# -------------------- host-side one-time parameter packing -------------------
def pack_params(p):
    """Pack all params into one (520, 128) f32 blob (done once, outside jit)."""
    P = np.zeros((PACKED_ROWS, LANES), np.float32)
    a = lambda t: np.asarray(t, np.float32)

    # W1: encoder  ([env|args] rows -> state cols 0..31), bias in row 127
    P[W1_OFF:W1_OFF + ENV_DIM, 0:STATE_DIM] = a(p["w_enc_env"])
    P[W1_OFF + ENV_DIM:W1_OFF + ENV_DIM + ARGS_DIM, 0:STATE_DIM] = a(p["w_enc_arg"])
    P[W1_OFF + ONE_LANE, 0:STATE_DIM] = a(p["b_enc"])[0]
    P[W1_OFF + ONE_LANE, ONE_LANE] = 1.0        # propagate the constant-1 lane

    # W2: core  ([state|prog] rows -> hidden cols 0..63), bias in row 127
    P[W2_OFF:W2_OFF + STATE_DIM, 0:HIDDEN] = a(p["w_core_s"])
    P[W2_OFF + STATE_DIM:W2_OFF + STATE_DIM + PROG_DIM, 0:HIDDEN] = a(p["w_core_p"])
    P[W2_OFF + ONE_LANE, 0:HIDDEN] = a(p["b_core"])[0]
    P[W2_OFF + ONE_LANE, ONE_LANE] = 1.0

    # W3: fused heads (ret | new_args | pkey), biases in row 127
    P[W3_OFF:W3_OFF + HIDDEN, RET_LANE:RET_LANE + 1] = a(p["w_ret"])
    P[W3_OFF + ONE_LANE, RET_LANE] = a(p["b_ret"])[0, 0]
    P[W3_OFF:W3_OFF + HIDDEN, ARG_LO:ARG_HI] = a(p["w_arg"])
    P[W3_OFF + ONE_LANE, ARG_LO:ARG_HI] = a(p["b_arg"])[0]
    P[W3_OFF:W3_OFF + HIDDEN, KEY_LO:KEY_HI] = a(p["w_key"])
    P[W3_OFF + ONE_LANE, KEY_LO:KEY_HI] = a(p["b_key"])[0]

    # W4: correlation-score projection (pkey_mem^T placed at the pkey lanes)
    P[W4_OFF + KEY_LO:W4_OFF + KEY_HI, SCORE_LO:SCORE_HI] = a(p["pkey_mem"]).T

    # prog_mem rows, pre-shifted into the prog lanes [32, 64) of z
    P[PROG_OFF:PROG_OFF + N_PROGS, STATE_DIM:STATE_DIM + PROG_DIM] = a(p["prog_mem"])
    return jnp.asarray(P)


# ------------------------------ wrapper ---------------------------------------
@jax.jit
def npi_forward(env, prog_id, args, packed):
    """env: (1, ENV_DIM) f32; prog_id: (1,) int32; args: (1, ARGS_DIM) f32."""
    # build the lane-padded input row [env | args | 0... | 1]
    x = jnp.zeros((1, LANES), jnp.float32)
    x = x.at[0, 0:ENV_DIM].set(env[0])
    x = x.at[0, ENV_DIM:ENV_DIM + ARGS_DIM].set(args[0])
    x = x.at[0, ONE_LANE].set(1.0)

    out = pl.pallas_call(
        npi_kernel,
        out_shape=jax.ShapeDtypeStruct((1, LANES), jnp.float32),
        in_specs=[
            pl.BlockSpec(memory_space=pltpu.MemorySpace.SMEM),   # prog_id scalar
            pl.BlockSpec(memory_space=pltpu.MemorySpace.VMEM),   # packed input row
            pl.BlockSpec(memory_space=pltpu.MemorySpace.VMEM),   # packed params blob
        ],
        out_specs=pl.BlockSpec(memory_space=pltpu.MemorySpace.VMEM),
    )(prog_id.astype(jnp.int32), x, packed)

    ret = out[0, RET_LANE]
    logp = out[0, SCORE_LO:SCORE_HI]
    new_args = out[0, ARG_LO:ARG_HI].reshape(1, ARGS_DIM)
    return ret, logp, new_args


# ------------------------- pure-JAX reference ---------------------------------
def npi_forward_ref(env, prog_id, args, p):
    state = jnp.maximum(env @ p["w_enc_env"] + args @ p["w_enc_arg"] + p["b_enc"], 0.0)
    prog = p["prog_mem"][prog_id[0]][None, :]
    h = jnp.maximum(state @ p["w_core_s"] + prog @ p["w_core_p"] + p["b_core"], 0.0)
    ret = jax.nn.sigmoid(h @ p["w_ret"] + p["b_ret"])[0, 0]
    pkey = h @ p["w_key"] + p["b_key"]
    new_args = h @ p["w_arg"] + p["b_arg"]
    scores = jnp.sum(p["pkey_mem"] * pkey, axis=1)
    logp = jax.nn.log_softmax(scores, axis=0)
    return ret, logp, new_args


def init_params(key):
    ks = jax.random.split(key, 16)
    n = jax.random.normal
    return {
        "prog_mem":  n(ks[0], (N_PROGS, PROG_DIM), jnp.float32),   # nn.Parameter(randn)
        "pkey_mem":  n(ks[1], (N_PROGS, KEY_DIM), jnp.float32),
        "w_enc_env": n(ks[2], (ENV_DIM, STATE_DIM), jnp.float32) * 0.1,
        "w_enc_arg": n(ks[3], (ARGS_DIM, STATE_DIM), jnp.float32) * 0.1,
        "b_enc":     n(ks[4], (1, STATE_DIM), jnp.float32) * 0.1,
        "w_core_s":  n(ks[5], (STATE_DIM, HIDDEN), jnp.float32) * 0.1,
        "w_core_p":  n(ks[6], (PROG_DIM, HIDDEN), jnp.float32) * 0.1,
        "b_core":    n(ks[7], (1, HIDDEN), jnp.float32) * 0.1,
        "w_ret":     n(ks[8], (HIDDEN, 1), jnp.float32) * 0.1,
        "b_ret":     n(ks[9], (1, 1), jnp.float32) * 0.1,
        "w_key":     n(ks[10], (HIDDEN, KEY_DIM), jnp.float32) * 0.1,
        "b_key":     n(ks[11], (1, KEY_DIM), jnp.float32) * 0.1,
        "w_arg":     n(ks[12], (HIDDEN, ARGS_DIM), jnp.float32) * 0.1,
        "b_arg":     n(ks[13], (1, ARGS_DIM), jnp.float32) * 0.1,
    }


if __name__ == "__main__":
    key = jax.random.PRNGKey(0)
    k_env, k_args, k_params = jax.random.split(key, 3)

    env = jax.random.normal(k_env, (1, ENV_DIM), jnp.float32)
    args = jax.random.normal(k_args, (1, ARGS_DIM), jnp.float32)
    prog_id = jnp.array([2], dtype=jnp.int32)
    params = init_params(k_params)

    packed = pack_params(params)                      # one-time host-side packing

    ret, logp, new_args = npi_forward(env, prog_id, args, packed)
    jax.block_until_ready((ret, logp, new_args))

    ret_r, logp_r, new_args_r = npi_forward_ref(env, prog_id, args, params)
    np.testing.assert_allclose(np.asarray(ret), np.asarray(ret_r), rtol=1e-4, atol=1e-4)
    np.testing.assert_allclose(np.asarray(logp), np.asarray(logp_r), rtol=1e-4, atol=1e-4)
    np.testing.assert_allclose(np.asarray(new_args), np.asarray(new_args_r),
                               rtol=1e-4, atol=1e-4)

    print("KERNEL_OK")
</pallas_src>

<mosaic_0001>
module attributes {stable_mosaic.version = 11 : i64} {
  func.func @npi_kernel(%arg0: memref<1xi32, #tpu.memory_space<smem>>, %arg1: memref<1x128xf32, #tpu.memory_space<vmem>>, %arg2: memref<520x128xf32, #tpu.memory_space<vmem>>, %arg3: memref<1x128xf32, #tpu.memory_space<vmem>>) attributes {dimension_semantics = [], scalar_prefetch = 0 : i64, scratch_operands = 0 : i64, tpu.core_type = #tpu.core_type<tc>} {
    %c0 = arith.constant 0 : index
    %c0_0 = arith.constant 0 : index
    %0 = vector.load %arg1[%c0, %c0_0] : memref<1x128xf32, #tpu.memory_space<vmem>>, vector<1x128xf32>
    %c0_1 = arith.constant 0 : index
    %c0_2 = arith.constant 0 : index
    %1 = vector.load %arg2[%c0_1, %c0_2] : memref<520x128xf32, #tpu.memory_space<vmem>>, vector<128x128xf32>
    %cst = arith.constant dense<0.000000e+00> : vector<1x128xf32>
    %2 = tpu.matmul %0, %1, %cst {dimension_numbers = #tpu.dot_dimension_numbers<[1], [0], [0], [1], [0, 0, 1, 1], [], []>} : vector<1x128xf32>, vector<128x128xf32>, vector<1x128xf32> -> vector<1x128xf32>
    %cst_3 = arith.constant 0.000000e+00 : f32
    %3 = vector.broadcast %cst_3 : f32 to vector<1x128xf32>
    %4 = arith.maximumf %2, %3 : vector<1x128xf32>
    %c0_4 = arith.constant 0 : index
    %5 = memref.load %arg0[%c0_4] : memref<1xi32, #tpu.memory_space<smem>>
    %c512_i32 = arith.constant 512 : i32
    %6 = arith.addi %c512_i32, %5 : i32
    %7 = arith.index_cast %6 : i32 to index
    %c0_5 = arith.constant 0 : index
    %8 = vector.load %arg2[%7, %c0_5] : memref<520x128xf32, #tpu.memory_space<vmem>>, vector<1x128xf32>
    %9 = arith.addf %4, %8 : vector<1x128xf32>
    %c128 = arith.constant 128 : index
    %c0_6 = arith.constant 0 : index
    %10 = vector.load %arg2[%c128, %c0_6] : memref<520x128xf32, #tpu.memory_space<vmem>>, vector<128x128xf32>
    %cst_7 = arith.constant dense<0.000000e+00> : vector<1x128xf32>
    %11 = tpu.matmul %9, %10, %cst_7 {dimension_numbers = #tpu.dot_dimension_numbers<[1], [0], [0], [1], [0, 0, 1, 1], [], []>} : vector<1x128xf32>, vector<128x128xf32>, vector<1x128xf32> -> vector<1x128xf32>
    %cst_8 = arith.constant 0.000000e+00 : f32
    %12 = vector.broadcast %cst_8 : f32 to vector<1x128xf32>
    %13 = arith.maximumf %11, %12 : vector<1x128xf32>
    %c256 = arith.constant 256 : index
    %c0_9 = arith.constant 0 : index
    %14 = vector.load %arg2[%c256, %c0_9] : memref<520x128xf32, #tpu.memory_space<vmem>>, vector<128x128xf32>
    %cst_10 = arith.constant dense<0.000000e+00> : vector<1x128xf32>
    %15 = tpu.matmul %13, %14, %cst_10 {dimension_numbers = #tpu.dot_dimension_numbers<[1], [0], [0], [1], [0, 0, 1, 1], [], []>} : vector<1x128xf32>, vector<128x128xf32>, vector<1x128xf32> -> vector<1x128xf32>
    %c384 = arith.constant 384 : index
    %c0_11 = arith.constant 0 : index
    %16 = vector.load %arg2[%c384, %c0_11] : memref<520x128xf32, #tpu.memory_space<vmem>>, vector<128x128xf32>
    %cst_12 = arith.constant dense<0.000000e+00> : vector<1x128xf32>
    %17 = tpu.matmul %15, %16, %cst_12 {dimension_numbers = #tpu.dot_dimension_numbers<[1], [0], [0], [1], [0, 0, 1, 1], [], []>} : vector<1x128xf32>, vector<128x128xf32>, vector<1x128xf32> -> vector<1x128xf32>
    %18 = tpu.iota {dimensions = array<i32: 1>} : vector<1x128xi32>
    %c1_i32 = arith.constant 1 : i32
    %19 = vector.broadcast %c1_i32 : i32 to vector<1x128xi32>
    %20 = arith.cmpi sge, %18, %19 : vector<1x128xi32>
    %c9_i32 = arith.constant 9 : i32
    %21 = vector.broadcast %c9_i32 : i32 to vector<1x128xi32>
    %22 = arith.cmpi slt, %18, %21 : vector<1x128xi32>
    %23 = arith.andi %20, %22 : vector<1x128xi1>
    %cst_13 = arith.constant -1.000000e+30 : f32
    %24 = vector.broadcast %cst_13 : f32 to vector<1x128xf32>
    %25 = arith.select %23, %17, %24 : vector<1x128xi1>, vector<1x128xf32>
    %cst_14 = arith.constant dense<0xFF800000> : vector<1xf32>
    %26 = vector.multi_reduction <maximumf>, %25, %cst_14 [1] : vector<1x128xf32> to vector<1xf32>
    %27 = vector.shape_cast %26 : vector<1xf32> to vector<1x1xf32>
    %28 = vector.broadcast %27 : vector<1x1xf32> to vector<1x128xf32>
    %29 = arith.subf %25, %28 : vector<1x128xf32>
    %30 = math.exp %29 : vector<1x128xf32>
    %cst_15 = arith.constant dense<0.000000e+00> : vector<1xf32>
    %31 = vector.multi_reduction <add>, %30, %cst_15 [1] : vector<1x128xf32> to vector<1xf32>
    %32 = vector.shape_cast %31 : vector<1xf32> to vector<1x1xf32>
    %33 = math.log %32 : vector<1x1xf32>
    %34 = vector.broadcast %27 : vector<1x1xf32> to vector<1x128xf32>
    %35 = arith.subf %25, %34 : vector<1x128xf32>
    %36 = vector.broadcast %33 : vector<1x1xf32> to vector<1x128xf32>
    %37 = arith.subf %35, %36 : vector<1x128xf32>
    %cst_16 = arith.constant 0.000000e+00 : f32
    %38 = vector.broadcast %cst_16 : f32 to vector<1x128xf32>
    %39 = arith.subf %38, %15 : vector<1x128xf32>
    %40 = math.exp %39 : vector<1x128xf32>
    %cst_17 = arith.constant 1.000000e+00 : f32
    %41 = vector.broadcast %cst_17 : f32 to vector<1x128xf32>
    %42 = arith.addf %41, %40 : vector<1x128xf32>
    %cst_18 = arith.constant 1.000000e+00 : f32
    %43 = vector.broadcast %cst_18 : f32 to vector<1x128xf32>
    %44 = arith.divf %43, %42 : vector<1x128xf32>
    %c0_i32 = arith.constant 0 : i32
    %45 = vector.broadcast %c0_i32 : i32 to vector<1x128xi32>
    %46 = arith.cmpi eq, %18, %45 : vector<1x128xi32>
    %cst_19 = arith.constant 0.000000e+00 : f32
    %47 = vector.broadcast %cst_19 : f32 to vector<1x128xf32>
    %48 = arith.select %46, %44, %47 : vector<1x128xi1>, vector<1x128xf32>
    %cst_20 = arith.constant 0.000000e+00 : f32
    %49 = vector.broadcast %cst_20 : f32 to vector<1x128xf32>
    %50 = arith.select %23, %37, %49 : vector<1x128xi1>, vector<1x128xf32>
    %51 = arith.addf %48, %50 : vector<1x128xf32>
    %c9_i32_21 = arith.constant 9 : i32
    %52 = vector.broadcast %c9_i32_21 : i32 to vector<1x128xi32>
    %53 = arith.cmpi sge, %18, %52 : vector<1x128xi32>
    %c17_i32 = arith.constant 17 : i32
    %54 = vector.broadcast %c17_i32 : i32 to vector<1x128xi32>
    %55 = arith.cmpi slt, %18, %54 : vector<1x128xi32>
    %56 = arith.andi %53, %55 : vector<1x128xi1>
    %cst_22 = arith.constant 0.000000e+00 : f32
    %57 = vector.broadcast %cst_22 : f32 to vector<1x128xf32>
    %58 = arith.select %56, %15, %57 : vector<1x128xi1>, vector<1x128xf32>
    %59 = arith.addf %51, %58 : vector<1x128xf32>
    %c0_23 = arith.constant 0 : index
    %c0_24 = arith.constant 0 : index
    %60 = vector.load %arg3[%c0_23, %c0_24] : memref<1x128xf32, #tpu.memory_space<vmem>>, vector<1x128xf32>
    tpu.vector_store %arg3[%c0_23, %c0_24], %59 {strides = array<i32>} : memref<1x128xf32, #tpu.memory_space<vmem>>, vector<1x128xf32>,
    return
  }
}

</mosaic_0001>

<bundles_post_ra>
// kernel: npi_forward.1
= control target key start
LH: loop header
LB: loop body
LE: loop exit
PB: predicated region body
PF: predicated region fallthrough
CT: control target
= control target key end

     0   :  { %9 = vsyncpa [#allocation4], 0  ;;  %s766_s12 = smov [#allocation3]   ;;  %s861_s0 = inlined_call_operand.<no memory space> [shape: s32[1], index: 0, kind: input, shape index: {}]   ;;  %s862_s1 = inlined_call_operand.vmem [shape: f32[1,128], index: 1, kind: input, shape index: {}]   ;;  %s863_s2 = inlined_call_operand.hbm [shape: f32[520,128], index: 2, kind: input, shape index: {}]   ;;  %s864_s3 = inlined_call_operand.vmem [shape: f32[1,128], index: 3, kind: output, shape index: {}]  }
   0x1   :  { %s19_s13 = sshll.u32 %s766_s12, 4  ;;  %s742_s16 = scalar_lea.hbm %s863_s2, 8320  ;;  %s20_s13 = int_to_ptr.vmem [resolvable:$true] %s19_s13 }
   0x2   :  { %p743_p0 = scmp.ne.s32.totalorder %s863_s2, %s742_s16  ;;  %p746_p1 = scmp.lt.u32.totalorder %s742_s16, %s863_s2 }
   0x4   :  { %p748_p2 = pnand %p746_p1, %p743_p0 }
   0x6   :  { %751 = shalt.err (!%p748_p2)
}
   0x7   :  { %s752_s21 = scalar_lea.vmem %s20_s13, 8320  ;;  %p757_p4 = scmp.lt.s32.totalorder %s20_s13, %s20_s13 }
   0x8   :  { %p753_p3 = scmp.ne.s32.totalorder %s20_s13, %s752_s21  ;;  %p758_p5 = scmp.lt.s32.totalorder %s752_s21, %s752_s21 }
   0xa   :  { %p759_p6 = por %p758_p5, %p757_p4 }
   0xc   :  { %p760_p7 = pnand %p759_p6, %p753_p3 }
   0xe   :  { %763 = shalt.err (!%p760_p7)
}
   0xf   :  { %s767_s22 = smov 128   ;;  %s768_s23 = smov 8  }
  0x10   :  { %25 = dma.hbm_to_vmem [thread:$0]  %s863_s2, 8320, %s20_s13, [#allocation4], %s767_s22, %s767_s22, %s768_s23  }
  0x11   :  { %764 = dma.done.wait [#allocation4], 8320  }
  0x12   :  { %765 = vsyncadd [#allocation4], 4294958976  ;;  %v769_v0 = vmov 0.0|0.0   ;;  %vm770_vm0 = vmmov 0   ;;  %v771_v1 = vmov 0.0   ;;  %v30_v2 = vld [vmem:[#allocation3] sm:$0xff] }
  0x13   :  { %632 = vmatprep.subr.bf16.mxu0 %v769_v0  ;;  %524 = vmatprep.mubr.msk.f32.mxu0 %vm770_vm0, %v771_v1  ;;  %v31_v3 = vld [vmem:[#allocation3 + $0x8] sm:$0xff]  ;;  %v32_v4 = vld [vmem:[#allocation3 + $0x10] sm:$0xff]  ;;  %v33_v6 = vld [vmem:[#allocation3 + $0x18] sm:$0xff]  ;;  %s421_s28 = scalar_lea.vmem [#allocation3], %s861_s0  ;;  %vm387_vm4 = vcmask 1040384  }
  0x14   :  { %656 = vmatprep.subr.bf16.mxu1 %v769_v0  ;;  %559 = vmatprep.mubr.msk.f32.mxu1 %vm770_vm0, %v771_v1  ;;  %v633_v5 = vpack.c.bf16 %v31_v3, %v30_v2  ;;  %v636_v7 = vpack.c.bf16 %v33_v6, %v32_v4  ;;  %v34_v8 = vld [vmem:[#allocation3 + $0x20] sm:$0xff]  ;;  %v35_v9 = vld [vmem:[#allocation3 + $0x28] sm:$0xff]  ;;  %v124_v12 = vld [vmem:[#allocation3 + $0x90] sm:$0xff] }
  0x15   :  { %v122_v10 = vld [vmem:[#allocation3 + $0x80] sm:$0xff]  ;;  %v123_v11 = vld [vmem:[#allocation3 + $0x88] sm:$0xff]  ;;  %v125_v13 = vld [vmem:[#allocation3 + $0x98] sm:$0xff]  ;;  %v639_v14 = vpack.c.bf16 %v35_v9, %v34_v8 }
  0x16   :  { %634 = vmatpush3.bf16.msra.mxu0 %v633_v5  ;;  %v657_v15 = vpack.c.bf16 %v123_v11, %v122_v10  ;;  %v36_v16 = vld [vmem:[#allocation3 + $0x30] sm:$0xff]  ;;  %v37_v17 = vld [vmem:[#allocation3 + $0x38] sm:$0xff]  ;;  %v660_v18 = vpack.c.bf16 %v125_v13, %v124_v12  ;;  %v126_v19 = vld [vmem:[#allocation3 + $0xa0] sm:$0xff] }
  0x17   :  { %635 = vmatprep.subr.bf16.mxu0 %v769_v0  ;;  %v127_v20 = vld [vmem:[#allocation3 + $0xa8] sm:$0xff]  ;;  %v642_v21 = vpack.c.bf16 %v37_v17, %v36_v16  ;;  %v38_v22 = vld [vmem:[#allocation3 + $0x40] sm:$0xff]  ;;  %v128_v25 = vld [vmem:[#allocation3 + $0xb0] sm:$0xff] }
  0x18   :  { %658 = vmatpush3.bf16.msra.mxu1 %v657_v15  ;;  %v39_v23 = vld [vmem:[#allocation3 + $0x48] sm:$0xff]  ;;  %v663_v24 = vpack.c.bf16 %v127_v20, %v126_v19  ;;  %v129_v26 = vld [vmem:[#allocation3 + $0xb8] sm:$0xff]  ;;  %v40_v28 = vld [vmem:[#allocation3 + $0x50] sm:$0xff] }
  0x19   :  { %659 = vmatprep.subr.bf16.mxu1 %v769_v0  ;;  %v645_v27 = vpack.c.bf16 %v39_v23, %v38_v22  ;;  %v41_v29 = vld [vmem:[#allocation3 + $0x58] sm:$0xff]  ;;  %v666_v30 = vpack.c.bf16 %v129_v26, %v128_v25  ;;  %v130_v31 = vld [vmem:[#allocation3 + $0xc0] sm:$0xff]  ;;  %v131_v32 = vld [vmem:[#allocation3 + $0xc8] sm:$0xff] }
  0x1a   :  { %637 = vmatpush3.bf16.msra.mxu0 %v636_v7  ;;  %v648_v33 = vpack.c.bf16 %v41_v29, %v40_v28  ;;  %v42_v34 = vld [vmem:[#allocation3 + $0x60] sm:$0xff]  ;;  %v43_v35 = vld [vmem:[#allocation3 + $0x68] sm:$0xff]  ;;  %v669_v36 = vpack.c.bf16 %v131_v32, %v130_v31  ;;  %v132_v37 = vld [vmem:[#allocation3 + $0xd0] sm:$0xff] }
  0x1b   :  { %638 = vmatprep.subr.bf16.mxu0 %v769_v0  ;;  %v133_v38 = vld [vmem:[#allocation3 + $0xd8] sm:$0xff]  ;;  %v651_v39 = vpack.c.bf16 %v43_v35, %v42_v34  ;;  %v44_v40 = vld [vmem:[#allocation3 + $0x70] sm:$0xff]  ;;  %v134_v43 = vld [vmem:[#allocation3 + $0xe0] sm:$0xff] }
  0x1c   :  { %661 = vmatpush3.bf16.msra.mxu1 %v660_v18  ;;  %v45_v41 = vld [vmem:[#allocation3 + $0x78] sm:$0xff]  ;;  %v672_v42 = vpack.c.bf16 %v133_v38, %v132_v37  ;;  %v135_v44 = vld [vmem:[#allocation3 + $0xe8] sm:$0xff]  ;;  %v29_v47 = vld [vmem:[%s862_s1] sm:$0x1] }
  0x1d   :  { %662 = vmatprep.subr.bf16.mxu1 %v769_v0  ;;  %v654_v45 = vpack.c.bf16 %v45_v41, %v44_v40  ;;  %v675_v46 = vpack.c.bf16 %v135_v44, %v134_v43  ;;  %v136_v48 = vld [vmem:[#allocation3 + $0xf0] sm:$0xff]  ;;  %v137_v49 = vld [vmem:[#allocation3 + $0xf8] sm:$0xff]  ;;  %v209_v51 = vld [vmem:[#allocation3 + $0x100] sm:$0xff] }
  0x1e   :  { %640 = vmatpush3.bf16.msra.mxu0 %v639_v14  ;;  %v678_v50 = vpack.c.bf16 %v137_v49, %v136_v48  ;;  %v210_v52 = vld [vmem:[#allocation3 + $0x108] sm:$0xff]  ;;  %v211_v53 = vld [vmem:[#allocation3 + $0x110] sm:$0xff]  ;;  %v212_v55 = vld [vmem:[#allocation3 + $0x118] sm:$0xff] }
  0x1f   :  { %641 = vmatprep.subr.bf16.mxu0 %v769_v0  ;;  %v681_v54 = vpack.c.bf16 %v210_v52, %v209_v51  ;;  %v684_v56 = vpack.c.bf16 %v212_v55, %v211_v53  ;;  %v213_v57 = vld [vmem:[#allocation3 + $0x120] sm:$0xff]  ;;  %v214_v58 = vld [vmem:[#allocation3 + $0x128] sm:$0xff]  ;;  %v215_v60 = vld [vmem:[#allocation3 + $0x130] sm:$0xff] }
  0x20   :  { %664 = vmatpush3.bf16.msra.mxu1 %v663_v24  ;;  %v687_v59 = vpack.c.bf16 %v214_v58, %v213_v57  ;;  %v216_v61 = vld [vmem:[#allocation3 + $0x138] sm:$0xff]  ;;  %v217_v63 = vld [vmem:[#allocation3 + $0x140] sm:$0xff]  ;;  %v218_v2 = vld [vmem:[#allocation3 + $0x148] sm:$0xff] }
  0x21   :  { %665 = vmatprep.subr.bf16.mxu1 %v769_v0  ;;  %v690_v62 = vpack.c.bf16 %v216_v61, %v215_v60  ;;  %v693_v3 = vpack.c.bf16 %v218_v2, %v217_v63  ;;  %v219_v4 = vld [vmem:[#allocation3 + $0x150] sm:$0xff]  ;;  %v220_v5 = vld [vmem:[#allocation3 + $0x158] sm:$0xff]  ;;  %v221_v7 = vld [vmem:[#allocation3 + $0x160] sm:$0xff] }
  0x22   :  { %643 = vmatpush3.bf16.msra.mxu0 %v642_v21  ;;  %v696_v6 = vpack.c.bf16 %v220_v5, %v219_v4  ;;  %v222_v8 = vld [vmem:[#allocation3 + $0x168] sm:$0xff]  ;;  %v423_v11 = vld [vmem:[%s421_s28 + $0x200] sm:$0x1]  ;;  %v223_v15 = vld [vmem:[#allocation3 + $0x170] sm:$0xff] }
  0x23   :  { %644 = vmatprep.subr.bf16.mxu0 %v769_v0  ;;  %v699_v9 = vpack.c.bf16 %v222_v8, %v221_v7  ;;  %v224_v16 = vld [vmem:[#allocation3 + $0x178] sm:$0xff]  ;;  %v295_v18 = vld [vmem:[#allocation3 + $0x180] sm:$0xff]  ;;  %v296_v19 = vld [vmem:[#allocation3 + $0x188] sm:$0xff] }
  0x24   :  { %667 = vmatpush3.bf16.msra.mxu1 %v666_v30  ;;  %v702_v17 = vpack.c.bf16 %v224_v16, %v223_v15  ;;  %v297_v20 = vld [vmem:[#allocation3 + $0x190] sm:$0xff]  ;;  %v705_v21 = vpack.c.bf16 %v296_v19, %v295_v18  ;;  %v298_v22 = vld [vmem:[#allocation3 + $0x198] sm:$0xff]  ;;  %v299_v24 = vld [vmem:[#allocation3 + $0x1a0] sm:$0xff] }
  0x25   :  { %668 = vmatprep.subr.bf16.mxu1 %v769_v0  ;;  %v708_v23 = vpack.c.bf16 %v298_v22, %v297_v20  ;;  %v300_v25 = vld [vmem:[#allocation3 + $0x1a8] sm:$0xff]  ;;  %v303_v29 = vld [vmem:[#allocation3 + $0x1c0] sm:$0xff]  ;;  %v305_v32 = vld [vmem:[#allocation3 + $0x1d0] sm:$0xff] }
  0x26   :  { %646 = vmatpush3.bf16.msra.mxu0 %v645_v27  ;;  %v711_v26 = vpack.c.bf16 %v300_v25, %v299_v24  ;;  %v302_v27 = vld [vmem:[#allocation3 + $0x1b8] sm:$0xff]  ;;  %v304_v30 = vld [vmem:[#allocation3 + $0x1c8] sm:$0xff]  ;;  %v307_v35 = vld [vmem:[#allocation3 + $0x1e0] sm:$0xff] }
  0x27   :  { %647 = vmatprep.subr.bf16.mxu0 %v769_v0  ;;  %v717_v31 = vpack.c.bf16 %v304_v30, %v303_v29  ;;  %v309_v38 = vld [vmem:[#allocation3 + $0x1f0] sm:$0xff] }
  0x28   :  { %670 = vmatpush3.bf16.msra.mxu1 %v669_v36  ;;  %v308_v36 = vld [vmem:[#allocation3 + $0x1e8] sm:$0xff] }
  0x29   :  { %671 = vmatprep.subr.bf16.mxu1 %v769_v0  ;;  %v723_v37 = vpack.c.bf16 %v308_v36, %v307_v35 }
  0x2a   :  { %649 = vmatpush3.bf16.msra.mxu0 %v648_v33  ;;  %v306_v33 = vld [vmem:[#allocation3 + $0x1d8] sm:$0xff] }
  0x2b   :  { %650 = vmatprep.subr.bf16.mxu0 %v769_v0  ;;  %v720_v34 = vpack.c.bf16 %v306_v33, %v305_v32 }
  0x2c   :  { %673 = vmatpush3.bf16.msra.mxu1 %v672_v42 }
  0x2d   :  { %674 = vmatprep.subr.bf16.mxu1 %v769_v0 }
  0x2e   :  { %652 = vmatpush3.bf16.msra.mxu0 %v651_v39  ;;  %v310_v39 = vld [vmem:[#allocation3 + $0x1f8] sm:$0xff] }
  0x2f   :  { %653 = vmatprep.subr.bf16.mxu0 %v769_v0  ;;  %v726_v40 = vpack.c.bf16 %v310_v39, %v309_v38 }
  0x30   :  { %676 = vmatpush3.bf16.msra.mxu1 %v675_v46  ;;  %v381_v46 = vlaneseq }
  0x31   :  { %677 = vmatprep.subr.bf16.mxu1 %v769_v0 }
  0x32   :  { %655 = vmatpush3.bf16.msra.mxu0 %v654_v45 }
  0x33   :  { %680 = vmatprep.subr.bf16.mxu0 %v769_v0 }
  0x34   :  { %679 = vmatpush3.bf16.msra.mxu1 %v678_v50 }
  0x35   :  { %525 = vmatmul.mubr.f32.vlgmr.msra.gmra.mrb[0].mxu0 %v29_v47  ;;  %704 = vmatprep.subr.bf16.mxu1 %v769_v0  ;;  %v382_v47 = vand.u32 127, %v381_v46 }
  0x36   :  { %594 = vmatprep.mubr.msk.f32.mxu0 %vm770_vm0, %v771_v1  ;;  %682 = vmatpush3.bf16.msra.mxu0 %v681_v54 }
  0x37   :  { %683 = vmatprep.subr.bf16.mxu0 %v769_v0  ;;  %vm383_vm1 = vcmp.ge.s32.totalorder %v382_v47, 1  ;;  %vm384_vm2 = vcmp.lt.s32.totalorder %v382_v47, 9  ;;  %vm410_vm5 = vcmp.ge.s32.totalorder %v382_v47, 9  ;;  %vm411_vm6 = vcmp.lt.s32.totalorder %v382_v47, 17 }
  0x38   :  { %vm850_vm3 = vmand %vm383_vm1, %vm384_vm2  ;;  %vm406_vm7 = vcmp.eq.s32.totalorder %v382_v47, 0 }
  0x39   :  { %vm412_vm8 = vmand %vm410_vm5, %vm411_vm6 }
  0x3a   :  { %685 = vmatpush3.bf16.msra.mxu0 %v684_v56 }
  0x3b   :  { %686 = vmatprep.subr.bf16.mxu0 %v769_v0 }
  0x3e   :  { %688 = vmatpush3.bf16.msra.mxu0 %v687_v59 }
  0x3f   :  { %689 = vmatprep.subr.bf16.mxu0 %v769_v0 }
  0x42   :  { %691 = vmatpush3.bf16.msra.mxu0 %v690_v62 }
  0x43   :  { %692 = vmatprep.subr.bf16.mxu0 %v769_v0 }
  0x46   :  { %694 = vmatpush3.bf16.msra.mxu0 %v693_v3 }
  0x47   :  { %695 = vmatprep.subr.bf16.mxu0 %v769_v0 }
  0x4a   :  { %697 = vmatpush3.bf16.msra.mxu0 %v696_v6 }
  0x4b   :  { %698 = vmatprep.subr.bf16.mxu0 %v769_v0 }
  0x4e   :  { %700 = vmatpush3.bf16.msra.mxu0 %v699_v9 }
  0x4f   :  { %701 = vmatprep.subr.bf16.mxu0 %v769_v0 }
  0x52   :  { %703 = vmatpush3.bf16.msra.mxu0 %v702_v17 }
 0x108   :  { %v112_v10 = vpop.f32.mrb[0].mxu0 }
 0x109   :  { %v116_v12 = vmax.f32 %v112_v10, 0.0  ;;  %v526_v13 = vpop.f32.mrb[1].mxu0 }
 0x10b   :  { %v121_v14 = vadd.f32 %v423_v11, %v116_v12 }
 0x10d   :  { %560 = vmatmul.mubr.f32.vlgmr.msra.gmra.mrb[0].mxu1 %v121_v14 }
 0x10e   :  { %629 = vmatprep.mubr.msk.f32.mxu1 %vm770_vm0, %v771_v1  ;;  %706 = vmatpush3.bf16.msra.mxu1 %v705_v21  ;;  %v301_v1 = vld [vmem:[#allocation3 + $0x1b0] sm:$0xff] }
 0x10f   :  { %707 = vmatprep.subr.bf16.mxu1 %v769_v0  ;;  %v714_v28 = vpack.c.bf16 %v302_v27, %v301_v1 }
 0x112   :  { %709 = vmatpush3.bf16.msra.mxu1 %v708_v23 }
 0x113   :  { %710 = vmatprep.subr.bf16.mxu1 %v769_v0 }
 0x116   :  { %712 = vmatpush3.bf16.msra.mxu1 %v711_v26 }
 0x117   :  { %713 = vmatprep.subr.bf16.mxu1 %v769_v0 }
 0x11a   :  { %715 = vmatpush3.bf16.msra.mxu1 %v714_v28 }
 0x11b   :  { %716 = vmatprep.subr.bf16.mxu1 %v769_v0 }
 0x11e   :  { %718 = vmatpush3.bf16.msra.mxu1 %v717_v31 }
 0x11f   :  { %719 = vmatprep.subr.bf16.mxu1 %v769_v0 }
 0x122   :  { %721 = vmatpush3.bf16.msra.mxu1 %v720_v34 }
 0x123   :  { %722 = vmatprep.subr.bf16.mxu1 %v769_v0 }
 0x126   :  { %724 = vmatpush3.bf16.msra.mxu1 %v723_v37 }
 0x127   :  { %725 = vmatprep.subr.bf16.mxu1 %v769_v0 }
 0x12a   :  { %727 = vmatpush3.bf16.msra.mxu1 %v726_v40 }
 0x1e0   :  { %v204_v41 = vpop.f32.mrb[0].mxu1 }
 0x1e1   :  { %v208_v42 = vmax.f32 %v204_v41, 0.0  ;;  %v561_v43 = vpop.f32.mrb[1].mxu1 }
 0x1e3   :  { %595 = vmatmul.mubr.f32.vlgmr.msra.gmra.mrb[2].mxu0 %v208_v42 }
 0x2b6   :  { %v291_v44 = vpop.f32.mrb[2].mxu0 }
 0x2b7   :  { %v596_v45 = vpop.f32.mrb[3].mxu0  ;;  %630 = vmatmul.mubr.f32.vlgmr.msra.gmra.mrb[2].mxu1 %v291_v44  ;;  %v400_v57 = vsub.f32 0.0, %v291_v44  ;;  %v413_v7 = vsel %vm412_vm8, %v291_v44, 0.0 }
 0x2b9   :  { %v401_v58 = vmul.f32 1.442695, %v400_v57 }
 0x38a   :  { %v377_v49 = vpop.f32.mrb[2].mxu1 }
 0x38b   :  { %v386_v0 = vsel %vm850_vm3, %v377_v49, -1e+30  ;;  %v631_v50 = vpop.f32.mrb[3].mxu1 }
 0x38c   :  { %v388_v51 = vsel %vm387_vm4, %v386_v0, -inf }
 0x38d   :  { %389 = vmax.xlane.f32.xlu0 %v388_v51 }
 0x41a   :  { %v390_v52 = vpop.xlane.xlu0 %389 }
 0x41b   :  { %v391_v53 = vsub.f32 %v386_v0, %v390_v52 }
 0x41d   :  { %v392_v54 = vmul.f32 1.442695, %v391_v53 }
 0x41f   :  { %734 = vpow2.f32 %v392_v54 }
 0x420   :  { %736 = vpow2.f32 %v401_v58 }
 0x429   :  { %v735_v55 = vpop.eup %734 }
 0x42a   :  { %v394_v56 = vsel %vm387_vm4, %v735_v55, 0.0  ;;  %v737_v59 = vpop.eup %736 }
 0x42b   :  { %395 = vadd.xlane.f32.xlu0 %v394_v56  ;;  %v403_v60 = vadd.f32 1.0, %v737_v59 }
 0x4b8   :  { %v396_v61 = vpop.xlane.xlu0 %395 }
 0x4b9   :  { %738 = vlog2.f32 %v396_v61 }
 0x4ba   :  { %740 = vrcp.f32 %v403_v60 }
 0x4c3   :  { %v739_v62 = vpop.eup %738 }
 0x4c4   :  { %v398_v63 = vmul.f32 0.6931472, %v739_v62  ;;  %v741_v2 = vpop.eup %740 }
 0x4c5   :  { %v407_v4 = vsel %vm406_vm7, %v741_v2, 0.0 }
 0x4c6   :  { %v399_v3 = vsub.f32 %v391_v53, %v398_v63 }
 0x4c8   :  { %v408_v5 = vsel %vm850_vm3, %v399_v3, 0.0 }
 0x4c9   :  { %v409_v6 = vadd.f32 %v408_v5, %v407_v4 }
 0x4cb   :  { %v414_v8 = vadd.f32 %v413_v7, %v409_v6 }
 0x4cd   :  { %415 = vst [vmem:[%s864_s3] sm:$0x1] %v414_v8 }
 0x4ce   :  { %420 = vsyncpa [#allocation4], 1 }

</bundles_post_ra>
